<compile_context>
chip_gen: v6e
topology: v6e:2x2x1
jax: 0.10.0
libtpu: 0.0.40
codegen_flags: <defaults>
</compile_context>

<pallas_src>
import functools
import math

import jax
import jax.numpy as jnp
from jax import lax
from jax.experimental import pallas as pl
from jax.experimental.pallas import tpu as pltpu


# ----------------------------------------------------------------------------
# Fused linear (+ optional LayerNorm, + optional ELU) kernel.
# Used for:  MLP hidden layers, the GRU input projection, and last_fc.
# ----------------------------------------------------------------------------
def _linear_kernel(*refs, apply_ln, apply_elu, eps):
    if apply_ln:
        x_ref, w_ref, b_ref, g_ref, beta_ref, o_ref = refs
    else:
        x_ref, w_ref, b_ref, o_ref = refs
        g_ref = beta_ref = None

    x = x_ref[...].astype(jnp.float32)
    y = jnp.dot(x, w_ref[...].astype(jnp.float32),
                preferred_element_type=jnp.float32) + b_ref[...]

    if apply_ln:
        mu = jnp.mean(y, axis=-1, keepdims=True)
        var = jnp.mean(jnp.square(y - mu), axis=-1, keepdims=True)
        y = (y - mu) * lax.rsqrt(var + eps) * g_ref[...] + beta_ref[...]

    if apply_elu:
        # ELU(alpha=1): x if x > 0 else exp(x) - 1
        y = jnp.where(y > 0.0, y, jnp.exp(y) - 1.0)

    o_ref[...] = y.astype(o_ref.dtype)


def linear_block(x, w, b, gamma=None, beta=None, *,
                 apply_ln=False, apply_elu=False, block_rows=256):
    """y = x @ w + b, optionally followed by LayerNorm and ELU. Row-tiled."""
    M, K = x.shape
    _, N = w.shape
    bm = M if M <= block_rows else block_rows
    grid = (pl.cdiv(M, bm),)

    in_specs = [
        pl.BlockSpec((bm, K), lambda i: (i, 0)),   # x rows
        pl.BlockSpec((K, N), lambda i: (0, 0)),    # weight (resident)
        pl.BlockSpec((1, N), lambda i: (0, 0)),    # bias
    ]
    args = [x, w, b.reshape(1, N)]
    if apply_ln:
        in_specs += [pl.BlockSpec((1, N), lambda i: (0, 0)),
                     pl.BlockSpec((1, N), lambda i: (0, 0))]
        args += [gamma.reshape(1, N), beta.reshape(1, N)]

    kernel = functools.partial(_linear_kernel, apply_ln=apply_ln,
                               apply_elu=apply_elu, eps=1e-5)
    return pl.pallas_call(
        kernel,
        out_shape=jax.ShapeDtypeStruct((M, N), x.dtype),
        grid_spec=pltpu.PrefetchScalarGridSpec(
            num_scalar_prefetch=0,
            grid=grid,
            in_specs=in_specs,
            out_specs=pl.BlockSpec((bm, N), lambda i: (i, 0)),
        ),
        compiler_params=pltpu.CompilerParams(
            dimension_semantics=("parallel",),
            vmem_limit_bytes=64 * 1024 * 1024,
        ),
    )(*args)


# ----------------------------------------------------------------------------
# GRU recurrent kernel: only the serial h -> h' chain. Gate pre-activations
# from the input (gi) are precomputed outside. One fused (N,H)x(H,3H) matmul
# per timestep, TT timesteps per grid step.
# ----------------------------------------------------------------------------
def _gru_recurrent_kernel(gi_ref, h0_ref, w_hh_ref, b_hn_ref, out_ref,
                          h_scratch, *, tt):
    s = pl.program_id(0)

    @pl.when(s == 0)
    def _():
        h_scratch[...] = h0_ref[...].astype(jnp.float32)

    w_hh = w_hh_ref[...].astype(jnp.float32)     # (H, 3H), loaded once per block
    b_hn = b_hn_ref[...]                         # (1, H)
    H = w_hh.shape[0]

    def step(i, h):
        gi = gi_ref[i].astype(jnp.float32)       # (N, 3H): x@W_ih + fused biases
        gh = jnp.dot(h, w_hh, preferred_element_type=jnp.float32)  # (N, 3H)
        # PyTorch gate order along the 3H axis: r, z, n
        r = jax.nn.sigmoid(gi[:, :H] + gh[:, :H])
        z = jax.nn.sigmoid(gi[:, H:2 * H] + gh[:, H:2 * H])
        n = jnp.tanh(gi[:, 2 * H:] + r * (gh[:, 2 * H:] + b_hn))
        h_new = (1.0 - z) * n + z * h
        out_ref[i] = h_new.astype(out_ref.dtype)
        return h_new

    h_final = lax.fori_loop(0, tt, step, h_scratch[...], unroll=True)
    h_scratch[...] = h_final


def gru_recurrent(gi_seq, h0, w_hh, b_hn, out_dtype, *, tt_block=8):
    """Run the serial GRU recurrence over precomputed gi (T, N, 3H)."""
    T, N, threeH = gi_seq.shape
    H = h0.shape[-1]
    TT = min(T, tt_block)
    T_pad = ((T + TT - 1) // TT) * TT
    if T_pad != T:
        gi_seq = jnp.pad(gi_seq, ((0, T_pad - T), (0, 0), (0, 0)))

    kernel = functools.partial(_gru_recurrent_kernel, tt=TT)
    out = pl.pallas_call(
        kernel,
        out_shape=jax.ShapeDtypeStruct((T_pad, N, H), out_dtype),
        grid_spec=pltpu.PrefetchScalarGridSpec(
            num_scalar_prefetch=0,
            grid=(T_pad // TT,),
            in_specs=[
                pl.BlockSpec((TT, N, threeH), lambda s: (s, 0, 0)),  # gi block
                pl.BlockSpec((N, H), lambda s: (0, 0)),              # h0
                pl.BlockSpec((H, threeH), lambda s: (0, 0)),         # w_hh
                pl.BlockSpec((1, H), lambda s: (0, 0)),              # b_hn
            ],
            out_specs=pl.BlockSpec((TT, N, H), lambda s: (s, 0, 0)),
            scratch_shapes=[pltpu.VMEM((N, H), jnp.float32)],        # h carry
        ),
        compiler_params=pltpu.CompilerParams(
            dimension_semantics=("arbitrary",),   # sequential recurrence
            vmem_limit_bytes=64 * 1024 * 1024,
        ),
    )(gi_seq, h0, w_hh, b_hn)
    return out[:T]


def gru_forward(x_seq, h0, w_ih, w_hh, b_ih, b_hh):
    """Full GRU over (T, N, I): parallel input projection + serial recurrence.

    Weights stored transposed, gate order (r, z, n):
      w_ih (I, 3H), w_hh (H, 3H), b_ih (1, 3H), b_hh (1, 3H).
    Returns (outputs (T, N, H), final hidden (N, H)).
    """
    T, N, I = x_seq.shape
    H = h0.shape[-1]
    # Fold b_hh for the r and z gates into the input-projection bias;
    # b_hn stays inside the recurrence (it lives inside r * (...)).
    gi_bias = b_ih.at[:, :2 * H].add(b_hh[:, :2 * H])
    b_hn = b_hh[:, 2 * H:]

    # One big parallel matmul over all T*N rows (MXU-efficient).
    gi = linear_block(x_seq.reshape(T * N, I), w_ih, gi_bias)
    gi = gi.reshape(T, N, 3 * H)

    out = gru_recurrent(gi, h0, w_hh, b_hn, x_seq.dtype)
    return out, out[T - 1]


# ----------------------------------------------------------------------------
# Mlp module equivalent (parameter setup + forward glue).
# ----------------------------------------------------------------------------
class MlpPallas:
    def __init__(self, hidden_sizes, output_size, input_size,
                 need_rnn=True, recurrent_hidden_size=32, *, key):
        assert need_rnn, "need_rnn=False path is not supported (matches torch)"
        self.input_size = input_size
        self.output_size = output_size
        self.recurrent_hidden_size = recurrent_hidden_size

        n_layers = len(hidden_sizes)
        keys = jax.random.split(key, 2 * n_layers + 6)
        ki = iter(keys)

        self.fc_ws, self.fc_bs, self.ln_gs, self.ln_bs = [], [], [], []
        in_size = input_size
        for next_size in hidden_sizes:
            next_size = int(next_size)
            bound = 1.0 / math.sqrt(in_size)
            self.fc_ws.append(jax.random.uniform(
                next(ki), (in_size, next_size), jnp.float32, -bound, bound))
            self.fc_bs.append(jax.random.uniform(
                next(ki), (next_size,), jnp.float32, -bound, bound))
            self.ln_gs.append(jnp.ones((next_size,), jnp.float32))
            self.ln_bs.append(jnp.zeros((next_size,), jnp.float32))
            in_size = next_size

        # GRU parameters, transposed layout, gate order (r, z, n).
        H = recurrent_hidden_size
        bound = 1.0 / math.sqrt(H)
        self.w_ih = jax.random.uniform(next(ki), (in_size, 3 * H), jnp.float32, -bound, bound)
        self.w_hh = jax.random.uniform(next(ki), (H, 3 * H), jnp.float32, -bound, bound)
        self.b_ih = jax.random.uniform(next(ki), (1, 3 * H), jnp.float32, -bound, bound)
        self.b_hh = jax.random.uniform(next(ki), (1, 3 * H), jnp.float32, -bound, bound)

        # last_fc, uniform(-0.003, 0.003) like the torch module.
        self.last_w = jax.random.uniform(next(ki), (H, output_size), jnp.float32, -0.003, 0.003)
        self.last_b = jax.random.uniform(next(ki), (output_size,), jnp.float32, -0.003, 0.003)

    def forward(self, x, hidden):
        h = x
        n_layers = len(self.fc_ws)
        for i in range(n_layers):
            h = linear_block(h, self.fc_ws[i], self.fc_bs[i],
                             self.ln_gs[i], self.ln_bs[i],
                             apply_ln=(i < n_layers - 1), apply_elu=True)

        # RNNBase.forward semantics
        if h.shape[0] == hidden.shape[0]:
            out_seq, hT = gru_forward(h[None], hidden, self.w_ih, self.w_hh,
                                      self.b_ih, self.b_hh)
            g_out, hxs = out_seq[0], hT
        else:
            N = hidden.shape[0]
            T = h.shape[0] // N
            out_seq, hT = gru_forward(h.reshape(T, N, h.shape[1]), hidden,
                                      self.w_ih, self.w_hh, self.b_ih, self.b_hh)
            g_out, hxs = out_seq.reshape(T * N, -1), hT[None, None]

        output = linear_block(g_out, self.last_w, self.last_b)
        return output, hxs


# ----------------------------------------------------------------------------
# Pure-JAX reference for verification.
# ----------------------------------------------------------------------------
def gru_reference(x_seq, h0, w_ih, w_hh, b_ih, b_hh):
    H = h0.shape[-1]

    def step(h, x_t):
        gi = x_t @ w_ih + b_ih
        gh = h @ w_hh + b_hh
        r = jax.nn.sigmoid(gi[:, :H] + gh[:, :H])
        z = jax.nn.sigmoid(gi[:, H:2 * H] + gh[:, H:2 * H])
        n = jnp.tanh(gi[:, 2 * H:] + r * gh[:, 2 * H:])
        h_new = (1.0 - z) * n + z * h
        return h_new, h_new

    hT, outs = lax.scan(step, h0, x_seq)
    return outs, hT


def mlp_reference(model, x, hidden):
    h = x
    n_layers = len(model.fc_ws)
    for i in range(n_layers):
        h = h @ model.fc_ws[i] + model.fc_bs[i]
        if i < n_layers - 1:
            mu = h.mean(-1, keepdims=True)
            var = jnp.square(h - mu).mean(-1, keepdims=True)
            h = (h - mu) / jnp.sqrt(var + 1e-5) * model.ln_gs[i] + model.ln_bs[i]
        h = jnp.where(h > 0, h, jnp.exp(h) - 1.0)

    if h.shape[0] == hidden.shape[0]:
        outs, hT = gru_reference(h[None], hidden, model.w_ih, model.w_hh,
                                 model.b_ih, model.b_hh)
        g_out, hxs = outs[0], hT
    else:
        N = hidden.shape[0]
        T = h.shape[0] // N
        outs, hT = gru_reference(h.reshape(T, N, -1), hidden, model.w_ih,
                                 model.w_hh, model.b_ih, model.b_hh)
        g_out, hxs = outs.reshape(T * N, -1), hT[None, None]

    out = g_out @ model.last_w + model.last_b
    return out, hxs


if __name__ == "__main__":
    key = jax.random.PRNGKey(0)
    k_model, k_x1, k_h1, k_x2, k_h2 = jax.random.split(key, 5)

    input_size, hidden_sizes, rec_h, out_size = 16, (32, 32), 32, 8
    N, T = 8, 4
    model = MlpPallas(hidden_sizes, out_size, input_size,
                      recurrent_hidden_size=rec_h, key=k_model)

    # Case 1: single timestep (x.shape[0] == hxs.shape[0])
    x1 = jax.random.normal(k_x1, (N, input_size), jnp.float32)
    h1 = jax.random.normal(k_h1, (N, rec_h), jnp.float32)
    y1, hxs1 = model.forward(x1, h1)
    jax.block_until_ready((y1, hxs1))
    ry1, rh1 = mlp_reference(model, x1, h1)
    assert y1.shape == (N, out_size) and hxs1.shape == (N, rec_h)
    assert jnp.allclose(y1, ry1, atol=1e-4, rtol=1e-4)
    assert jnp.allclose(hxs1, rh1, atol=1e-4, rtol=1e-4)

    # Case 2: packed sequence (x.shape[0] == T * hxs.shape[0])
    x2 = jax.random.normal(k_x2, (T * N, input_size), jnp.float32)
    h2 = jax.random.normal(k_h2, (N, rec_h), jnp.float32)
    y2, hxs2 = model.forward(x2, h2)
    jax.block_until_ready((y2, hxs2))
    ry2, rh2 = mlp_reference(model, x2, h2)
    assert y2.shape == (T * N, out_size) and hxs2.shape == (1, 1, N, rec_h)
    assert jnp.allclose(y2, ry2, atol=1e-4, rtol=1e-4)
    assert jnp.allclose(hxs2, rh2, atol=1e-4, rtol=1e-4)

    print("KERNEL_OK")
</pallas_src>

<mosaic_0001>
module attributes {stable_mosaic.version = 11 : i64} {
  func.func @_linear_kernel(%arg0: i32, %arg1: memref<8x16xf32, #tpu.memory_space<vmem>>, %arg2: memref<16x32xf32, #tpu.memory_space<vmem>>, %arg3: memref<1x32xf32, #tpu.memory_space<vmem>>, %arg4: memref<1x32xf32, #tpu.memory_space<vmem>>, %arg5: memref<1x32xf32, #tpu.memory_space<vmem>>, %arg6: memref<8x32xf32, #tpu.memory_space<vmem>>) attributes {dimension_semantics = [#tpu.dimension_semantics<parallel>], iteration_bounds = array<i64: 1>, scalar_prefetch = 0 : i64, scratch_operands = 0 : i64, tpu.core_type = #tpu.core_type<tc>, window_params = [{transform_indices = @transform_0, window_bounds = array<i64: 8, 16>}, {pipeline_mode = #tpu.pipeline_mode<synchronous>, transform_indices = @transform_1, window_bounds = array<i64: 16, 32>}, {pipeline_mode = #tpu.pipeline_mode<synchronous>, transform_indices = @transform_2, window_bounds = array<i64: 1, 32>}, {pipeline_mode = #tpu.pipeline_mode<synchronous>, transform_indices = @transform_3, window_bounds = array<i64: 1, 32>}, {pipeline_mode = #tpu.pipeline_mode<synchronous>, transform_indices = @transform_4, window_bounds = array<i64: 1, 32>}, {transform_indices = @transform_5, window_bounds = array<i64: 8, 32>}]} {
    %c0 = arith.constant 0 : index
    %c0_0 = arith.constant 0 : index
    %0 = vector.load %arg1[%c0, %c0_0] : memref<8x16xf32, #tpu.memory_space<vmem>>, vector<8x16xf32>
    %c0_1 = arith.constant 0 : index
    %c0_2 = arith.constant 0 : index
    %1 = vector.load %arg2[%c0_1, %c0_2] : memref<16x32xf32, #tpu.memory_space<vmem>>, vector<16x32xf32>
    %cst = arith.constant dense<0.000000e+00> : vector<8x32xf32>
    %2 = tpu.matmul %0, %1, %cst {dimension_numbers = #tpu.dot_dimension_numbers<[1], [0], [0], [1], [0, 0, 1, 1], [], []>} : vector<8x16xf32>, vector<16x32xf32>, vector<8x32xf32> -> vector<8x32xf32>
    %c0_3 = arith.constant 0 : index
    %c0_4 = arith.constant 0 : index
    %3 = vector.load %arg3[%c0_3, %c0_4] : memref<1x32xf32, #tpu.memory_space<vmem>>, vector<1x32xf32>
    %4 = vector.broadcast %3 : vector<1x32xf32> to vector<8x32xf32>
    %5 = arith.addf %2, %4 : vector<8x32xf32>
    %cst_5 = arith.constant dense<0.000000e+00> : vector<8xf32>
    %6 = vector.multi_reduction <add>, %5, %cst_5 [1] : vector<8x32xf32> to vector<8xf32>
    %7 = vector.shape_cast %6 : vector<8xf32> to vector<8x1xf32>
    %cst_6 = arith.constant 3.200000e+01 : f32
    %8 = vector.broadcast %cst_6 : f32 to vector<8x1xf32>
    %9 = arith.divf %7, %8 : vector<8x1xf32>
    %10 = vector.broadcast %9 : vector<8x1xf32> to vector<8x32xf32>
    %11 = arith.subf %5, %10 : vector<8x32xf32>
    %12 = arith.mulf %11, %11 : vector<8x32xf32>
    %cst_7 = arith.constant dense<0.000000e+00> : vector<8xf32>
    %13 = vector.multi_reduction <add>, %12, %cst_7 [1] : vector<8x32xf32> to vector<8xf32>
    %14 = vector.shape_cast %13 : vector<8xf32> to vector<8x1xf32>
    %cst_8 = arith.constant 3.200000e+01 : f32
    %15 = vector.broadcast %cst_8 : f32 to vector<8x1xf32>
    %16 = arith.divf %14, %15 : vector<8x1xf32>
    %17 = vector.broadcast %9 : vector<8x1xf32> to vector<8x32xf32>
    %18 = arith.subf %5, %17 : vector<8x32xf32>
    %cst_9 = arith.constant 9.99999974E-6 : f32
    %19 = vector.broadcast %cst_9 : f32 to vector<8x1xf32>
    %20 = arith.addf %16, %19 : vector<8x1xf32>
    %21 = math.rsqrt %20 : vector<8x1xf32>
    %22 = vector.broadcast %21 : vector<8x1xf32> to vector<8x32xf32>
    %23 = arith.mulf %18, %22 : vector<8x32xf32>
    %c0_10 = arith.constant 0 : index
    %c0_11 = arith.constant 0 : index
    %24 = vector.load %arg4[%c0_10, %c0_11] : memref<1x32xf32, #tpu.memory_space<vmem>>, vector<1x32xf32>
    %25 = vector.broadcast %24 : vector<1x32xf32> to vector<8x32xf32>
    %26 = arith.mulf %23, %25 : vector<8x32xf32>
    %c0_12 = arith.constant 0 : index
    %c0_13 = arith.constant 0 : index
    %27 = vector.load %arg5[%c0_12, %c0_13] : memref<1x32xf32, #tpu.memory_space<vmem>>, vector<1x32xf32>
    %28 = vector.broadcast %27 : vector<1x32xf32> to vector<8x32xf32>
    %29 = arith.addf %26, %28 : vector<8x32xf32>
    %cst_14 = arith.constant 0.000000e+00 : f32
    %30 = vector.broadcast %cst_14 : f32 to vector<8x32xf32>
    %31 = arith.cmpf ogt, %29, %30 : vector<8x32xf32>
    %32 = math.exp %29 : vector<8x32xf32>
    %cst_15 = arith.constant 1.000000e+00 : f32
    %33 = vector.broadcast %cst_15 : f32 to vector<8x32xf32>
    %34 = arith.subf %32, %33 : vector<8x32xf32>
    %35 = arith.select %31, %29, %34 : vector<8x32xi1>, vector<8x32xf32>
    %c0_16 = arith.constant 0 : index
    %c0_17 = arith.constant 0 : index
    %36 = vector.load %arg6[%c0_16, %c0_17] : memref<8x32xf32, #tpu.memory_space<vmem>>, vector<8x32xf32>
    tpu.vector_store %arg6[%c0_16, %c0_17], %35 {strides = array<i32>} : memref<8x32xf32, #tpu.memory_space<vmem>>, vector<8x32xf32>,
    return
  }
  func.func @transform_0(%arg0: i32) -> (i32, i32) {
    %c0_i32 = arith.constant 0 : i32
    %c0_i32_0 = arith.constant 0 : i32
    return %arg0, %c0_i32 : i32, i32
  }
  func.func @transform_1(%arg0: i32) -> (i32, i32) {
    %c0_i32 = arith.constant 0 : i32
    %c0_i32_0 = arith.constant 0 : i32
    %c0_i32_1 = arith.constant 0 : i32
    return %c0_i32, %c0_i32_0 : i32, i32
  }
  func.func @transform_2(%arg0: i32) -> (i32, i32) {
    %c0_i32 = arith.constant 0 : i32
    %c0_i32_0 = arith.constant 0 : i32
    %c0_i32_1 = arith.constant 0 : i32
    return %c0_i32, %c0_i32_0 : i32, i32
  }
  func.func @transform_3(%arg0: i32) -> (i32, i32) {
    %c0_i32 = arith.constant 0 : i32
    %c0_i32_0 = arith.constant 0 : i32
    %c0_i32_1 = arith.constant 0 : i32
    return %c0_i32, %c0_i32_0 : i32, i32
  }
  func.func @transform_4(%arg0: i32) -> (i32, i32) {
    %c0_i32 = arith.constant 0 : i32
    %c0_i32_0 = arith.constant 0 : i32
    %c0_i32_1 = arith.constant 0 : i32
    return %c0_i32, %c0_i32_0 : i32, i32
  }
  func.func @transform_5(%arg0: i32) -> (i32, i32) {
    %c0_i32 = arith.constant 0 : i32
    %c0_i32_0 = arith.constant 0 : i32
    return %arg0, %c0_i32 : i32, i32
  }
}

</mosaic_0001>

<bundles_post_ra>
// kernel: tpu_custom_call.1
= control target key start
LH: loop header
LB: loop body
LE: loop exit
PB: predicated region body
PF: predicated region fallthrough
CT: control target
= control target key end

     0   :  { %10 = vsyncpa [#allocation3], 0  ;;  %s334_s0 = inlined_call_operand.hbm [shape: f32[8,16], index: 0, kind: input, shape index: {}]   ;;  %s335_s1 = inlined_call_operand.hbm [shape: f32[16,32], index: 1, kind: input, shape index: {}]   ;;  %s336_s2 = inlined_call_operand.vmem [shape: f32[1,32], index: 2, kind: input, shape index: {}]   ;;  %s337_s3 = inlined_call_operand.vmem [shape: f32[1,32], index: 3, kind: input, shape index: {}]   ;;  %s338_s4 = inlined_call_operand.vmem [shape: f32[1,32], index: 4, kind: input, shape index: {}]   ;;  %s339_s5 = inlined_call_operand.hbm [shape: f32[8,32], index: 5, kind: output, shape index: {}]  }
   0x1   :  { %11 = vsyncpa [#allocation6], 0 }
   0x2   :  { %12 = vsyncpa [#allocation4], 0  ;;  %s276_s18 = smov [#allocation2]   ;;  %s277_s20 = smov [#allocation5]  }
   0x3   :  { %s19_s19 = sshll.u32 %s276_s18, 4  ;;  %s28_s21 = sshll.u32 %s277_s20, 4  ;;  %s20_s19 = int_to_ptr.vmem [resolvable:$true] %s19_s19  ;;  %s29_s21 = int_to_ptr.vmem [resolvable:$true] %s28_s21 }
   0x4   :  { %s218_s22 = scalar_lea.vmem %s20_s19, 128  ;;  %p223_p1 = scmp.lt.s32.totalorder %s20_s19, %s20_s19 }
   0x5   :  { %p219_p0 = scmp.ne.s32.totalorder %s20_s19, %s218_s22  ;;  %p224_p2 = scmp.lt.s32.totalorder %s218_s22, %s218_s22 }
   0x7   :  { %p225_p3 = por %p224_p2, %p223_p1 }
   0x9   :  { %p226_p4 = pnand %p225_p3, %p219_p0 }
   0xb   :  { %229 = shalt.err (!%p226_p4)
}
   0xc   :  { %22 = dma.hbm_to_vmem [thread:$0]  %s334_s0, 128, %s20_s19, [#allocation3]  }
   0xd   :  { %s238_s25 = scalar_lea.vmem %s29_s21, 256  ;;  %p243_p6 = scmp.lt.s32.totalorder %s29_s21, %s29_s21 }
   0xe   :  { %p239_p5 = scmp.ne.s32.totalorder %s29_s21, %s238_s25  ;;  %p244_p7 = scmp.lt.s32.totalorder %s238_s25, %s238_s25 }
  0x10   :  { %p245_p8 = por %p244_p7, %p243_p6 }
  0x12   :  { %p246_p9 = pnand %p245_p8, %p239_p5 }
  0x14   :  { %249 = shalt.err (!%p246_p9)
}
  0x15   :  { %s278_s26 = smov 128   ;;  %s279_s27 = smov 8  }
  0x16   :  { %34 = dma.hbm_to_vmem [thread:$0]  %s335_s1, 256, %s29_s21, [#allocation6], %s278_s26, %s278_s26, %s279_s27  }
  0x17   :  { %270 = dma.done.wait [#allocation3], 128  }
  0x18   :  { %271 = vsyncadd [#allocation3], 4294967168 }
  0x19   :  { %272 = dma.done.wait [#allocation6], 256  }
  0x1a   :  { %273 = vsyncadd [#allocation6], 4294967040  ;;  %v280_v0 = vmov 0.0   ;;  %vm281_vm0 = vmmov 0   ;;  %v49_v1 = vld [vmem:[#allocation5 + $0x8] sm:$0xff]  ;;  %v48_v2 = vld [vmem:[#allocation5] sm:$0xff] }
  0x1b   :  { %192 = vmatprep.subr.mxu0 %v280_v0  ;;  %196 = vmatprep.mubr.msk.f32.mxu0 %vm281_vm0, %v280_v0  ;;  %v47_v3 = vld [vmem:[#allocation2] sm:$0xff]  ;;  %vm57_vm1 = vcmask 130048   ;;  %vm131_vm2 = vcmask 261120   ;;  %s282_s8 = smov [#allocation7]  }
  0x1c   :  { %193 = vmatpush3.msra.mxu0 %v49_v1  ;;  %v184_v4 = vld [vmem:[%s336_s2] ss:$0 sm:$0xff]  ;;  %s174_s9 = sshll.u32 %s282_s8, 4  ;;  %s175_s9 = int_to_ptr.vmem [resolvable:$true] %s174_s9 }
  0x1d   :  { %194 = vmatprep.subr.mxu0 %v280_v0  ;;  %v186_v18 = vld [vmem:[%s337_s3] ss:$0 sm:$0xff]  ;;  %s250_s10 = scalar_lea.vmem %s175_s9, 128  ;;  %p255_p11 = scmp.lt.s32.totalorder %s175_s9, %s175_s9 }
  0x1e   :  { %195 = vmatpush3.msra.mxu0 %v48_v2  ;;  %v187_v20 = vld [vmem:[%s338_s4] ss:$0 sm:$0xff]  ;;  %p251_p10 = scmp.ne.s32.totalorder %s175_s9, %s250_s10  ;;  %p256_p12 = scmp.lt.s32.totalorder %s250_s10, %s250_s10 }
  0x1f   :  { %197 = vmatmul.mubr.msk.f32.vlgmr.msra.gmra.mxu0 %vm57_vm1, %v47_v3 }
  0x20   :  { %p257_p13 = por %p256_p12, %p255_p11 }
  0x22   :  { %p258_p0 = pnand %p257_p13, %p251_p10 }
  0xdf   :  { %v127_v5 = vpop.f32.mrf.mxu0 }
  0xe0   :  { %v128_v6 = vadd.f32 %v184_v4, %v127_v5 }
  0xe1   :  { %v198_v7 = vpop.f32.mrf.mxu0 }
  0xe2   :  { %v132_v8 = vsel %vm131_vm2, %v128_v6, 0.0 }
  0xe3   :  { %133 = vadd.xlane.f32.xlu0 %v132_v8 }
 0x16c   :  { %v134_v9 = vpop.xlane.xlu0 %133 }
 0x16d   :  { %v136_v10 = vmul.f32 0.03125, %v134_v9 }
 0x16f   :  { %v137_v11 = vsub.f32 %v128_v6, %v136_v10 }
 0x171   :  { %v138_v12 = vmul.f32 %v137_v11, %v137_v11 }
 0x173   :  { %v139_v13 = vsel %vm131_vm2, %v138_v12, 0.0 }
 0x174   :  { %140 = vadd.xlane.f32.xlu0 %v139_v13 }
 0x1fd   :  { %v141_v14 = vpop.xlane.xlu0 %140 }
 0x1fe   :  { %v142_v15 = vmul.f32 0.03125, %v141_v14 }
 0x200   :  { %v143_v16 = vadd.f32 1e-05, %v142_v15 }
 0x202   :  { %206 = vrsqrt.f32 %v143_v16 }
 0x20f   :  { %v207_v17 = vpop.eup %206 }
 0x210   :  { %v145_v19 = vmul.f32 %v207_v17, %v137_v11 }
 0x212   :  { %v153_v21 = vmul.f32 %v186_v18, %v145_v19 }
 0x214   :  { %v161_v22 = vadd.f32 %v187_v20, %v153_v21 }
 0x216   :  { %v163_v23 = vmul.f32 1.442695, %v161_v22  ;;  %vm162_vm3 = vcmp.gt.f32.partialorder %v161_v22, 0.0 }
 0x218   :  { %208 = vpow2.f32 %v163_v23 }
 0x225   :  { %v209_v24 = vpop.eup %208 }
 0x226   :  { %v188_v25 = vadd.f32 -1.0, %v209_v24 }
 0x228   :  { %v166_v26 = vsel %vm162_vm3, %v161_v22, %v188_v25 }
 0x229   :  { %167 = vst.msk [vmem:[#allocation7] sm:$0xff] %vm131_vm2, %v166_v26 }
 0x22a   :  { %261 = shalt.err (!%p258_p0)
}
 0x22b   :  { %177 = dma.vmem_to_hbm [thread:$0]  %s175_s9, 128, %s339_s5, [#allocation4]  }
 0x22c   :  { %274 = dma.done.wait [#allocation4], 128  }
 0x22d   :  { %275 = vsyncadd [#allocation4], 4294967168 }
 0x22e   :  { %181 = vsyncpa [#allocation3], 1 }
 0x22f   :  { %182 = vsyncpa [#allocation6], 1 }
 0x230   :  { %183 = vsyncpa [#allocation4], 1 }

</bundles_post_ra>
